<compile_context>
chip_gen: v5e
topology: v5e:2x2
jax: 0.10.0
libtpu: 0.0.40
codegen_flags: <defaults>
</compile_context>

<pallas_src>
import jax
import jax.numpy as jnp
from jax import lax
from jax.experimental import pallas as pl
from jax.experimental.pallas import tpu as pltpu


# --------------------------------------------------------------------------- #
# Kernel                                                                      #
# --------------------------------------------------------------------------- #
def _make_kernel(num_ids, num_classes, fold_cls):
    """Build the kernel body.  fold_cls=True means the (1, dim) classifier row
    was folded into w_proj_t offline, so there is no w_cls operand."""

    def kernel(*refs):
        if fold_cls:
            ids_ref, prompt_ref, p_ref, wproj_ref, out_ref = refs
            wcls_ref = None
        else:
            ids_ref, prompt_ref, p_ref, wproj_ref, wcls_ref, out_ref = refs

        # --- L2-normalize every row of the (num_models, dim) table in registers
        #     (one f32 vreg of work).  rsqrt(max(sumsq, eps^2)) == 1/max(norm, 1e-12),
        #     matching torch F.normalize's clamp.
        p = p_ref[...]                                           # (num_models, dim)
        sumsq = jnp.sum(p * p, axis=1, keepdims=True)            # lane-reduce (XLU)
        p_norm = p * lax.rsqrt(jnp.maximum(sumsq, 1e-24))        # EUP rsqrt

        # --- prompt projection on the MXU, canonical (K-major) contraction.
        #     wproj_ref is (text_dim, dim) (pre-transposed once at weight load;
        #     classifier row pre-folded in when num_classes == 1).
        proj = jnp.dot(prompt_ref[...], wproj_ref[...],
                       preferred_element_type=jnp.float32)       # (tb, dim)

        # --- data-dependent row selection as a vectorized masked sublane-reduce:
        #     no dynamic sublane gather, no VMEM scratch round-trip.
        row_iota = lax.broadcasted_iota(jnp.int32, p.shape, 0)   # hoisted out of loop
        pieces = []
        for i in range(num_ids):                                 # tiny static unroll
            row = jnp.sum(jnp.where(row_iota == ids_ref[i], p_norm, 0.0),
                          axis=0, keepdims=True)                 # (1, dim)
            scaled = proj * row                                  # (tb, dim)  VPU
            if fold_cls:
                # classifier already folded into wproj: lane-reduce instead of
                # paying MXU push/pop for an N=1 matmul.
                pieces.append(jnp.sum(scaled, axis=1, keepdims=True))    # (tb, 1)
            else:
                pieces.append(jnp.dot(scaled, wcls_ref[...],
                                      preferred_element_type=jnp.float32))  # (tb, C)

        # single full-block store (tb, num_ids * num_classes)
        out_ref[...] = jnp.concatenate(pieces, axis=1)

    return kernel


# --------------------------------------------------------------------------- #
# One-time weight preparation (amortized across all forward calls)            #
# --------------------------------------------------------------------------- #
def prepare_mf_params(P_table, w_cls, w_proj=None):
    """Cast params to f32, transpose Linear weights to (in, out) layout, and
    for the num_classes==1 router case fold the classifier row into the
    projection weight.  Do this once at model-load time, NOT per call."""
    P_table = jnp.asarray(P_table, jnp.float32)                  # (num_models, dim)
    w_cls = jnp.asarray(w_cls, jnp.float32)                      # (num_classes, dim)
    dim = P_table.shape[1]
    if w_proj is None:
        # use_proj=False: identity projection (module asserts text_dim == dim)
        w_proj = jnp.eye(dim, dtype=jnp.float32)
    w_proj = jnp.asarray(w_proj, jnp.float32)                    # (dim, text_dim)

    num_classes = w_cls.shape[0]
    if num_classes == 1:
        # W_eff_t[t, d] = W_proj[d, t] * w_cls[0, d]   (classifier folded, transposed)
        w_proj_t = (w_proj * w_cls[0][:, None]).T                # (text_dim, dim)
        w_cls_t = None
    else:
        w_proj_t = w_proj.T                                      # (text_dim, dim)
        w_cls_t = w_cls.T                                        # (dim, num_classes)
    return {"P": P_table, "w_proj_t": w_proj_t, "w_cls_t": w_cls_t,
            "num_classes": num_classes}


# --------------------------------------------------------------------------- #
# Wrappers                                                                    #
# --------------------------------------------------------------------------- #
def mf_forward_batched(params, model_id, prompt_embeds, block_b=128):
    """Batched forward: prompt_embeds (B, text_dim) -> logits (B, num_ids, num_classes).
    Weights stay resident in VMEM across the batch grid axis."""
    P_table = params["P"]
    w_proj_t = params["w_proj_t"]
    w_cls_t = params["w_cls_t"]
    num_classes = params["num_classes"]
    fold_cls = w_cls_t is None

    num_models, dim = P_table.shape
    text_dim = w_proj_t.shape[0]

    ids = jnp.asarray(model_id, jnp.int32).reshape(-1)
    num_ids = int(ids.shape[0])
    prompts = jnp.asarray(prompt_embeds, jnp.float32)
    B = prompts.shape[0]

    # Batch tiling: whole batch in one step when small (block == full dim is
    # always a legal block), else 8-aligned tiles with zero-padding.
    if B <= block_b:
        tb, Bp = B, B
    else:
        tb = max(8, (block_b // 8) * 8)
        Bp = -(-B // tb) * tb
    if Bp != B:
        prompts = jnp.pad(prompts, ((0, Bp - B), (0, 0)))

    out_cols = num_ids * num_classes
    kernel = _make_kernel(num_ids, num_classes, fold_cls)

    def _const_spec(shape):
        return pl.BlockSpec(shape, lambda b, ids_ref: (0, 0))   # resident across batch

    in_specs = [
        pl.BlockSpec((tb, text_dim), lambda b, ids_ref: (b, 0)),   # per-step prompt tile
        _const_spec((num_models, dim)),                            # P table (one vreg)
        _const_spec((text_dim, dim)),                              # W_proj (pre-transposed/folded)
    ]
    operands = [prompts, P_table, w_proj_t]
    if not fold_cls:
        in_specs.append(_const_spec((dim, num_classes)))           # W_cls.T
        operands.append(w_cls_t)

    grid_spec = pltpu.PrefetchScalarGridSpec(
        num_scalar_prefetch=1,                                     # model_id -> SMEM
        grid=(Bp // tb,),
        in_specs=in_specs,
        out_specs=pl.BlockSpec((tb, out_cols), lambda b, ids_ref: (b, 0)),
        scratch_shapes=[],
    )

    out2d = pl.pallas_call(
        kernel,
        out_shape=jax.ShapeDtypeStruct((Bp, out_cols), jnp.float32),
        grid_spec=grid_spec,
        compiler_params=pltpu.CompilerParams(
            dimension_semantics=("parallel",)),                    # shards across v7x's 2 TCs
    )(ids, *operands)

    return out2d[:B].reshape(B, num_ids, num_classes)


def mf_forward(params, model_id, prompt_embed):
    """Single-prompt forward matching the PyTorch module: returns logits.squeeze()."""
    out = mf_forward_batched(params, model_id, prompt_embed[None, :])
    return jnp.squeeze(out)


# --------------------------------------------------------------------------- #
# Pure-JAX reference mirroring the PyTorch semantics                          #
# --------------------------------------------------------------------------- #
def reference_forward(P_table, w_proj, w_cls, model_id, prompt_embeds):
    me = jnp.take(P_table, model_id, axis=0)                          # (num_ids, dim)
    l2 = jnp.sqrt(jnp.sum(me * me, axis=1, keepdims=True))
    me_n = me / jnp.maximum(l2, 1e-12)
    proj = prompt_embeds @ w_proj.T                                   # (B, dim)
    return jnp.einsum("bd,id,cd->bic", proj, me_n, w_cls)             # (B, num_ids, C)


if __name__ == "__main__":
    # Shapes consistent with the module: dim=128, num_models=8, text_dim=256,
    # num_classes=1, use_proj=True.  Two model ids, as in pred_win_rate.
    dim, num_models, text_dim, num_classes = 128, 8, 256, 1

    key = jax.random.PRNGKey(0)
    k_p, k_proj, k_cls, k_prompt, k_batch, k_cls3 = jax.random.split(key, 6)

    P_table = jax.random.normal(k_p, (num_models, dim), dtype=jnp.float32)
    w_proj = jax.random.normal(k_proj, (dim, text_dim), dtype=jnp.float32) * 0.05   # Linear(text_dim->dim)
    w_cls = jax.random.normal(k_cls, (num_classes, dim), dtype=jnp.float32) * 0.05  # Linear(dim->1)

    model_id = jnp.array([1, 3], dtype=jnp.int32)
    # TODO(synk): the real module fetches prompt_embed from an external embedding
    # API (OpenAI / Ollama / SentenceTransformer); synthesized here.
    prompt_embed = jax.random.normal(k_prompt, (text_dim,), dtype=jnp.float32)

    # one-time weight prep (fold + transpose + cast)
    params = prepare_mf_params(P_table, w_cls, w_proj)

    # --- single-prompt path (module forward semantics) ---
    out = mf_forward(params, model_id, prompt_embed)
    out = jax.block_until_ready(out)
    ref = jnp.squeeze(reference_forward(P_table, w_proj, w_cls, model_id,
                                        prompt_embed[None, :]))
    assert out.shape == ref.shape == (2,)
    assert jnp.allclose(out, ref, atol=1e-4, rtol=1e-4), (out, ref)

    # --- batched prompts (weights resident, multi-step grid, padding path) ---
    B = 12
    prompts = jax.random.normal(k_batch, (B, text_dim), dtype=jnp.float32)
    out_b = mf_forward_batched(params, model_id, prompts, block_b=8)
    out_b = jax.block_until_ready(out_b)
    ref_b = reference_forward(P_table, w_proj, w_cls, model_id, prompts)
    assert out_b.shape == ref_b.shape == (B, 2, 1)
    assert jnp.allclose(out_b, ref_b, atol=1e-4, rtol=1e-4)

    # --- general num_classes > 1 path (no classifier folding) ---
    w_cls3 = jax.random.normal(k_cls3, (3, dim), dtype=jnp.float32) * 0.05
    params3 = prepare_mf_params(P_table, w_cls3, w_proj)
    out_3 = mf_forward_batched(params3, model_id, prompts)
    out_3 = jax.block_until_ready(out_3)
    ref_3 = reference_forward(P_table, w_proj, w_cls3, model_id, prompts)
    assert out_3.shape == ref_3.shape == (B, 2, 3)
    assert jnp.allclose(out_3, ref_3, atol=1e-4, rtol=1e-4)

    print("KERNEL_OK")
</pallas_src>

<mosaic_0001>
module attributes {stable_mosaic.version = 11 : i64} {
  func.func @kernel(%arg0: i32, %arg1: memref<2xi32, #tpu.memory_space<smem>>, %arg2: memref<1x256xf32, #tpu.memory_space<vmem>>, %arg3: memref<8x128xf32, #tpu.memory_space<vmem>>, %arg4: memref<256x128xf32, #tpu.memory_space<vmem>>, %arg5: memref<1x2xf32, #tpu.memory_space<vmem>>) attributes {dimension_semantics = [#tpu.dimension_semantics<parallel>], iteration_bounds = array<i64: 1>, scalar_prefetch = 1 : i64, scratch_operands = 0 : i64, tpu.core_type = #tpu.core_type<tc>, window_params = [{transform_indices = @transform_0, window_bounds = array<i64: 1, 256>}, {pipeline_mode = #tpu.pipeline_mode<synchronous>, transform_indices = @transform_1, window_bounds = array<i64: 8, 128>}, {pipeline_mode = #tpu.pipeline_mode<synchronous>, transform_indices = @transform_2, window_bounds = array<i64: 256, 128>}, {transform_indices = @transform_3, window_bounds = array<i64: 1, 2>}]} {
    %c0 = arith.constant 0 : index
    %c0_0 = arith.constant 0 : index
    %0 = vector.load %arg3[%c0, %c0_0] : memref<8x128xf32, #tpu.memory_space<vmem>>, vector<8x128xf32>
    %1 = arith.mulf %0, %0 : vector<8x128xf32>
    %cst = arith.constant dense<0.000000e+00> : vector<8xf32>
    %2 = vector.multi_reduction <add>, %1, %cst [1] : vector<8x128xf32> to vector<8xf32>
    %3 = vector.shape_cast %2 : vector<8xf32> to vector<8x1xf32>
    %cst_1 = arith.constant 1.000000e-24 : f32
    %4 = vector.broadcast %cst_1 : f32 to vector<8x1xf32>
    %5 = arith.maximumf %3, %4 : vector<8x1xf32>
    %6 = math.rsqrt %5 : vector<8x1xf32>
    %7 = vector.broadcast %6 : vector<8x1xf32> to vector<8x128xf32>
    %8 = arith.mulf %0, %7 : vector<8x128xf32>
    %c0_2 = arith.constant 0 : index
    %c0_3 = arith.constant 0 : index
    %9 = vector.load %arg2[%c0_2, %c0_3] : memref<1x256xf32, #tpu.memory_space<vmem>>, vector<1x256xf32>
    %c0_4 = arith.constant 0 : index
    %c0_5 = arith.constant 0 : index
    %10 = vector.load %arg4[%c0_4, %c0_5] : memref<256x128xf32, #tpu.memory_space<vmem>>, vector<256x128xf32>
    %cst_6 = arith.constant dense<0.000000e+00> : vector<1x128xf32>
    %11 = tpu.matmul %9, %10, %cst_6 {dimension_numbers = #tpu.dot_dimension_numbers<[1], [0], [0], [1], [0, 0, 1, 1], [], []>} : vector<1x256xf32>, vector<256x128xf32>, vector<1x128xf32> -> vector<1x128xf32>
    %12 = tpu.iota {dimensions = array<i32: 0>} : vector<8x128xi32>
    %c0_7 = arith.constant 0 : index
    %13 = memref.load %arg1[%c0_7] : memref<2xi32, #tpu.memory_space<smem>>
    %14 = vector.broadcast %13 : i32 to vector<8x128xi32>
    %15 = arith.cmpi eq, %12, %14 : vector<8x128xi32>
    %cst_8 = arith.constant 0.000000e+00 : f32
    %16 = vector.broadcast %cst_8 : f32 to vector<8x128xf32>
    %17 = arith.select %15, %8, %16 : vector<8x128xi1>, vector<8x128xf32>
    %cst_9 = arith.constant dense<0.000000e+00> : vector<128xf32>
    %18 = vector.multi_reduction <add>, %17, %cst_9 [0] : vector<8x128xf32> to vector<128xf32>
    %19 = vector.shape_cast %18 : vector<128xf32> to vector<1x128xf32>
    %20 = arith.mulf %11, %19 : vector<1x128xf32>
    %cst_10 = arith.constant dense<0.000000e+00> : vector<1xf32>
    %21 = vector.multi_reduction <add>, %20, %cst_10 [1] : vector<1x128xf32> to vector<1xf32>
    %22 = vector.shape_cast %21 : vector<1xf32> to vector<1x1xf32>
    %c1 = arith.constant 1 : index
    %23 = memref.load %arg1[%c1] : memref<2xi32, #tpu.memory_space<smem>>
    %24 = vector.broadcast %23 : i32 to vector<8x128xi32>
    %25 = arith.cmpi eq, %12, %24 : vector<8x128xi32>
    %cst_11 = arith.constant 0.000000e+00 : f32
    %26 = vector.broadcast %cst_11 : f32 to vector<8x128xf32>
    %27 = arith.select %25, %8, %26 : vector<8x128xi1>, vector<8x128xf32>
    %cst_12 = arith.constant dense<0.000000e+00> : vector<128xf32>
    %28 = vector.multi_reduction <add>, %27, %cst_12 [0] : vector<8x128xf32> to vector<128xf32>
    %29 = vector.shape_cast %28 : vector<128xf32> to vector<1x128xf32>
    %30 = arith.mulf %11, %29 : vector<1x128xf32>
    %cst_13 = arith.constant dense<0.000000e+00> : vector<1xf32>
    %31 = vector.multi_reduction <add>, %30, %cst_13 [1] : vector<1x128xf32> to vector<1xf32>
    %32 = vector.shape_cast %31 : vector<1xf32> to vector<1x1xf32>
    %33 = tpu.concatenate %22, %32 in 1 : vector<1x1xf32>, vector<1x1xf32> -> vector<1x2xf32>
    %c0_14 = arith.constant 0 : index
    %c0_15 = arith.constant 0 : index
    %34 = vector.load %arg5[%c0_14, %c0_15] : memref<1x2xf32, #tpu.memory_space<vmem>>, vector<1x2xf32>
    tpu.vector_store %arg5[%c0_14, %c0_15], %33 {strides = array<i32>} : memref<1x2xf32, #tpu.memory_space<vmem>>, vector<1x2xf32>,
    return
  }
  func.func @transform_0(%arg0: i32, %arg1: memref<2xi32, #tpu.memory_space<smem>>) -> (i32, i32) {
    %c0_i32 = arith.constant 0 : i32
    %c0_i32_0 = arith.constant 0 : i32
    return %arg0, %c0_i32 : i32, i32
  }
  func.func @transform_1(%arg0: i32, %arg1: memref<2xi32, #tpu.memory_space<smem>>) -> (i32, i32) {
    %c0_i32 = arith.constant 0 : i32
    %c0_i32_0 = arith.constant 0 : i32
    %c0_i32_1 = arith.constant 0 : i32
    return %c0_i32, %c0_i32_0 : i32, i32
  }
  func.func @transform_2(%arg0: i32, %arg1: memref<2xi32, #tpu.memory_space<smem>>) -> (i32, i32) {
    %c0_i32 = arith.constant 0 : i32
    %c0_i32_0 = arith.constant 0 : i32
    %c0_i32_1 = arith.constant 0 : i32
    return %c0_i32, %c0_i32_0 : i32, i32
  }
  func.func @transform_3(%arg0: i32, %arg1: memref<2xi32, #tpu.memory_space<smem>>) -> (i32, i32) {
    %c0_i32 = arith.constant 0 : i32
    %c0_i32_0 = arith.constant 0 : i32
    return %arg0, %c0_i32 : i32, i32
  }
}

</mosaic_0001>

<bundles_post_ra>
// kernel: tpu_custom_call.1
= control target key start
LH: loop header
LB: loop body
LE: loop exit
PB: predicated region body
PF: predicated region fallthrough
CT: control target
= control target key end

     0   :  { %s340_s18 = smov [#allocation3]   ;;  %s392_s0 = inlined_call_operand.hbm [shape: s32[2], index: 0, kind: input, shape index: {}]   ;;  %s393_s1 = inlined_call_operand.hbm [shape: f32[1,256], index: 1, kind: input, shape index: {}]   ;;  %s394_s2 = inlined_call_operand.hbm [shape: f32[8,128], index: 2, kind: input, shape index: {}]   ;;  %s395_s3 = inlined_call_operand.hbm [shape: f32[256,128], index: 3, kind: input, shape index: {}]   ;;  %s396_s4 = inlined_call_operand.hbm [shape: f32[1,2], index: 4, kind: output, shape index: {}]  }
   0x1   :  { %s10_s17 = sshll.u32 %s392_s0, 4  ;;  %s11_s17 = int_to_ptr.hbm [resolvable:$true] %s10_s17 }
   0x2   :  { %13 = dma.hbm_to_smem %s11_s17, 16, %s340_s18, [#allocation2] }
   0x3   :  { %332 = dma.done.wait [#allocation2], 16 }
   0x4   :  { %333 = vsyncadd [#allocation2], 4294967280 }
   0x5   :  { %16 = sfence }
   0x6   :  { %17 = vsyncpa [#allocation5], 0 }
   0x7   :  { %18 = vsyncpa [#allocation8], 0  ;;  %s36_s21 = sshll.u32 %s394_s2, 4  ;;  %s37_s21 = int_to_ptr.hbm [resolvable:$true] %s36_s21 }
   0x8   :  { %19 = vsyncpa [#allocation6], 0  ;;  %s341_s22 = smov [#allocation7]   ;;  %s25_s0 = sshll.u32 %s393_s1, 4  ;;  %s26_s0 = int_to_ptr.hbm [resolvable:$true] %s25_s0 }
   0x9   :  { %s38_s23 = sshll.u32 %s341_s22, 4  ;;  %s342_s26 = smov [#allocation4]   ;;  %s39_s23 = int_to_ptr.vmem [resolvable:$true] %s38_s23 }
   0xa   :  { %41 = dma.hbm_to_vmem [thread:$0]  %s37_s21, 128, %s39_s23, [#allocation8]  }
   0xb   :  { %s27_s27 = sshll.u32 %s342_s26, 4  ;;  %s46_s30 = sshll.u32 %s395_s3, 4  ;;  %s28_s27 = int_to_ptr.vmem [resolvable:$true] %s27_s27  ;;  %s47_s30 = int_to_ptr.hbm [resolvable:$true] %s46_s30 }
   0xc   :  { %30 = dma.hbm_to_vmem [thread:$0]  %s26_s0, 32, %s28_s27, [#allocation5]  }
   0xd   :  { %s343_s2 = smov [#allocation9]   ;;  %s344_s6 = smov 128  }
   0xe   :  { %s48_s5 = sshll.u32 %s343_s2, 4  ;;  %s345_s7 = smov 8   ;;  %s49_s5 = int_to_ptr.vmem [resolvable:$true] %s48_s5 }
   0xf   :  { %54 = dma.hbm_to_vmem [thread:$0]  %s47_s30, 4096, %s49_s5, [#allocation8], %s344_s6, %s344_s6, %s345_s7  }
  0x10   :  { %334 = dma.done.wait [#allocation5], 32  }
  0x11   :  { %335 = vsyncadd [#allocation5], 4294967264 }
  0x12   :  { %336 = dma.done.wait [#allocation8], 4224  }
  0x13   :  { %337 = vsyncadd [#allocation8], 4294963072  ;;  %v99_v0 = vld [vmem:[#allocation9 + $0x78] sm:$0xff]  ;;  %v98_v2 = vld [vmem:[#allocation9 + $0x70] sm:$0xff]  ;;  %s214_s1 = sld [smem:[#allocation3 + $0x1]]  ;;  %v161_v42 = vlaneseq  ;;  %vm174_vm5 = vcmask 1040384  }
  0x14   :  { %v115_v1 = vld [vmem:[#allocation9 + $0xf8] sm:$0xff]  ;;  %121 = vmatpush.msra.mxu0 %v99_v0  ;;  %v114_v3 = vld [vmem:[#allocation9 + $0xf0] sm:$0xff]  ;;  %v97_v6 = vld [vmem:[#allocation9 + $0x68] sm:$0xff]  ;;  %s163_s3 = sld [smem:[#allocation3]]  ;;  %s346_s8 = smov [#allocation10]   ;;  %vm192_vm6 = vcmask 7168  }
  0x15   :  { %141 = vmatpush.msra.mxu1 %v115_v1  ;;  %v384_v4 = vld [vmem:[#allocation7] sm:$0xff]  ;;  %v113_v7 = vld [vmem:[#allocation9 + $0xe8] sm:$0xff]  ;;  %v96_v8 = vld [vmem:[#allocation9 + $0x60] sm:$0xff]  ;;  %v162_v45 = vshrl.u32 %v161_v42, 7  ;;  %s201_s9 = sshll.u32 %s346_s8, 4  ;;  %s203_s12 = sshll.u32 %s396_s4, 4  ;;  %s202_s9 = int_to_ptr.vmem [resolvable:$true] %s201_s9  ;;  %s204_s12 = int_to_ptr.hbm [resolvable:$true] %s203_s12 }
  0x16   :  { %v68_v5 = vmul.f32 %v384_v4, %v384_v4  ;;  %122 = vmatpush.msra.mxu0 %v98_v2  ;;  %v112_v9 = vld [vmem:[#allocation9 + $0xe0] sm:$0xff]  ;;  %v95_v10 = vld [vmem:[#allocation9 + $0x58] sm:$0xff]  ;;  %v94_v12 = vld [vmem:[#allocation9 + $0x50] sm:$0xff]  ;;  %vm194_vm7 = vcmask 8192  }
  0x17   :  { %142 = vmatpush.msra.mxu1 %v114_v3  ;;  %v111_v11 = vld [vmem:[#allocation9 + $0xd8] sm:$0xff]  ;;  %v110_v13 = vld [vmem:[#allocation9 + $0xd0] sm:$0xff]  ;;  %v93_v14 = vld [vmem:[#allocation9 + $0x48] sm:$0xff] }
  0x18   :  { %69 = vadd.xlane.f32.xlu0 %v68_v5  ;;  %123 = vmatpush.msra.mxu0 %v97_v6  ;;  %v109_v15 = vld [vmem:[#allocation9 + $0xc8] sm:$0xff]  ;;  %v92_v16 = vld [vmem:[#allocation9 + $0x40] sm:$0xff]  ;;  %v91_v18 = vld [vmem:[#allocation9 + $0x38] sm:$0xff] }
  0x19   :  { %143 = vmatpush.msra.mxu1 %v113_v7  ;;  %v108_v17 = vld [vmem:[#allocation9 + $0xc0] sm:$0xff]  ;;  %v107_v19 = vld [vmem:[#allocation9 + $0xb8] sm:$0xff]  ;;  %v90_v20 = vld [vmem:[#allocation9 + $0x30] sm:$0xff]  ;;  %v179_v46 = vstv %s214_s1 }
  0x1a   :  { %124 = vmatpush.msra.mxu0 %v96_v8  ;;  %v106_v21 = vld [vmem:[#allocation9 + $0xb0] sm:$0xff]  ;;  %v89_v22 = vld [vmem:[#allocation9 + $0x28] sm:$0xff]  ;;  %v88_v24 = vld [vmem:[#allocation9 + $0x20] sm:$0xff]  ;;  %v164_v47 = vstv %s163_s3  ;;  %vm180_vm3 = vcmp.eq.s32.totalorder %v162_v45, %v179_v46 }
  0x1b   :  { %144 = vmatpush.msra.mxu1 %v112_v9  ;;  %v105_v23 = vld [vmem:[#allocation9 + $0xa8] sm:$0xff]  ;;  %v104_v25 = vld [vmem:[#allocation9 + $0xa0] sm:$0xff]  ;;  %v87_v26 = vld [vmem:[#allocation9 + $0x18] sm:$0xff]  ;;  %vm165_vm4 = vcmp.eq.s32.totalorder %v162_v45, %v164_v47 }
  0x1c   :  { %125 = vmatpush.msra.mxu0 %v95_v10  ;;  %v103_v27 = vld [vmem:[#allocation9 + $0x98] sm:$0xff]  ;;  %v86_v28 = vld [vmem:[#allocation9 + $0x10] sm:$0xff]  ;;  %v85_v31 = vld [vmem:[#allocation9 + $0x8] sm:$0xff] }
  0x1d   :  { %145 = vmatpush.msra.mxu1 %v111_v11  ;;  %v102_v29 = vld [vmem:[#allocation9 + $0x90] sm:$0xff]  ;;  %v101_v32 = vld [vmem:[#allocation9 + $0x88] sm:$0xff]  ;;  %v84_v33 = vld [vmem:[#allocation9] sm:$0xff] }
  0x1e   :  { %126 = vmatpush.msra.mxu0 %v94_v12  ;;  %v83_v30 = vld [vmem:[#allocation4] sm:$0x3]  ;;  %v100_v34 = vld [vmem:[#allocation9 + $0x80] sm:$0xff] }
  0x1f   :  { %146 = vmatpush.msra.mxu1 %v110_v13  ;;  %v117_v35 = vperm.slane %v83_v30, 0  ;;  %v118_v36 = vperm.slane %v83_v30, 1 }
  0x20   :  { %127 = vmatpush.msra.mxu0 %v93_v14 }
  0x21   :  { %147 = vmatpush.msra.mxu1 %v109_v15 }
  0x22   :  { %128 = vmatpush.msra.mxu0 %v92_v16 }
  0x23   :  { %148 = vmatpush.msra.mxu1 %v108_v17 }
  0x24   :  { %129 = vmatpush.msra.mxu0 %v91_v18 }
  0x25   :  { %149 = vmatpush.msra.mxu1 %v107_v19 }
  0x26   :  { %130 = vmatpush.msra.mxu0 %v90_v20 }
  0x27   :  { %150 = vmatpush.msra.mxu1 %v106_v21 }
  0x28   :  { %131 = vmatpush.msra.mxu0 %v89_v22 }
  0x29   :  { %151 = vmatpush.msra.mxu1 %v105_v23 }
  0x2a   :  { %132 = vmatpush.msra.mxu0 %v88_v24 }
  0x2b   :  { %152 = vmatpush.msra.mxu1 %v104_v25 }
  0x2c   :  { %133 = vmatpush.msra.mxu0 %v87_v26 }
  0x2d   :  { %153 = vmatpush.msra.mxu1 %v103_v27 }
  0x2e   :  { %134 = vmatpush.msra.mxu0 %v86_v28 }
  0x2f   :  { %154 = vmatpush.msra.mxu1 %v102_v29 }
  0x30   :  { %135 = vmatpush.msra.mxu0 %v85_v31 }
  0x31   :  { %155 = vmatpush.msra.mxu1 %v101_v32 }
  0x32   :  { %136 = vmatpush.msra.mxu0 %v84_v33 }
  0x33   :  { %156 = vmatpush.msra.mxu1 %v100_v34  ;;  %137 = vmatmul.f32.vlgmr.msra.gmra.mxu0 %v117_v35 }
  0x34   :  { %157 = vmatmul.f32.vlgmr.msra.gmra.mxu1 %v118_v36 }
  0x8b   :  { %v70_v37 = vpop.xlane.xlu0 %69 }
  0x8c   :  { %v71_v38 = vmax.f32 %v70_v37, 1e-24 }
  0x8e   :  { %222 = vrsqrt.f32 %v71_v38  ;;  %vm78_vm0 = vweird.f32 %v71_v38 }
  0x94   :  { %v223_v39 = vpop.eup %222 }
  0x95   :  { %v73_v40 = vmul.f32 %v223_v39, %v71_v38  ;;  %vm79_vm1 = vweird.f32 %v223_v39 }
  0x96   :  { %vm80_vm2 = vmor %vm78_vm0, %vm79_vm1 }
  0x97   :  { %v74_v41 = vmul.f32 %v223_v39, %v73_v40 }
  0x99   :  { %v75_v43 = vmul.f32 0.5, %v74_v41 }
  0x9b   :  { %v76_v44 = vsub.f32 1.5, %v75_v43 }
  0x9d   :  { %v77_v48 = vmul.f32 %v223_v39, %v76_v44 }
  0x9f   :  { %v81_v49 = vsel %vm80_vm2, %v223_v39, %v77_v48 }
  0xa0   :  { %v82_v50 = vmul.f32 %v81_v49, %v384_v4 }
  0xa2   :  { %v181_v51 = vsel %vm180_vm3, %v82_v50, 0.0  ;;  %v166_v52 = vsel %vm165_vm4, %v82_v50, 0.0 }
  0xa3   :  { %v182_v53 = vrot.slane %v181_v51, 4  ;;  %v167_v54 = vrot.slane %v166_v52, 4 }
  0xa5   :  { %v183_v55 = vadd.f32 %v182_v53, %v181_v51  ;;  %v168_v56 = vadd.f32 %v167_v54, %v166_v52 }
  0xa7   :  { %v184_v57 = vrot.slane %v183_v55, 2  ;;  %v169_v58 = vrot.slane %v168_v56, 2 }
  0xa9   :  { %v185_v59 = vadd.f32 %v184_v57, %v183_v55  ;;  %v170_v60 = vadd.f32 %v169_v58, %v168_v56 }
  0xab   :  { %v186_v61 = vrot.slane %v185_v59, 1  ;;  %v171_v62 = vrot.slane %v170_v60, 1 }
  0xad   :  { %v187_v2 = vadd.f32 %v186_v61, %v185_v59  ;;  %v172_v3 = vadd.f32 %v171_v62, %v170_v60 }
  0xb0   :  { %v138_v63 = vpop.f32.mrf.mxu0 }
  0xb1   :  { %v158_v0 = vpop.f32.mrf.mxu1 }
  0xb2   :  { %v159_v1 = vadd.f32 %v158_v0, %v138_v63 }
  0xb4   :  { %v188_v5 = vmul.f32 %v187_v2, %v159_v1  ;;  %v173_v4 = vmul.f32 %v172_v3, %v159_v1 }
  0xb6   :  { %v189_v6 = vsel %vm174_vm5, %v188_v5, 0.0  ;;  %v175_v7 = vsel %vm174_vm5, %v173_v4, 0.0 }
  0xb7   :  { %190 = vadd.xlane.f32.xlu1 %v189_v6  ;;  %176 = vadd.xlane.f32.xlu0 %v175_v7 }
 0x12a   :  { %v191_v8 = vpop.xlane.xlu1 %190  ;;  %v177_v9 = vpop.xlane.xlu0 %176 }
 0x12b   :  { %v193_v10 = vsel %vm192_vm6, %v177_v9, %v191_v8 }
 0x12c   :  { %195 = vst.msk [vmem:[#allocation10] sm:$0x1] %vm194_vm7, %v193_v10 }
 0x12d   :  { %206 = dma.vmem_to_hbm [thread:$0]  %s202_s9, 16, %s204_s12, [#allocation6]  }
 0x12e   :  { %338 = dma.done.wait [#allocation6], 16  }
 0x12f   :  { %339 = vsyncadd [#allocation6], 4294967280 }
 0x130   :  { %211 = vsyncpa [#allocation5], 1 }
 0x131   :  { %212 = vsyncpa [#allocation8], 1 }
 0x132   :  { %213 = vsyncpa [#allocation6], 1 }

</bundles_post_ra>
